<compile_context>
chip_gen: v7x
topology: tpu7x:2x2x1
jax: 0.10.0
libtpu: 0.0.40
codegen_flags: <defaults>
</compile_context>

<pallas_src>
import functools

import jax
import jax.numpy as jnp
from jax.experimental import pallas as pl
from jax.experimental.pallas import tpu as pltpu

_MiB = 1024 * 1024


def _round_up(v, m):
    return ((v + m - 1) // m) * m


def _scale_embedding_kernel(x_ref, w_ref, b_ref, o_ref):
    # x_ref: (tm, K) bf16   w_ref: (K, N) bf16   b_ref: (1, N) f32   o_ref: (tm, N) f32
    # Single MXU matmul with f32 accumulation + hoisted f32 bias add; the store
    # is one lane-dense slab (N is a multiple of 128).
    acc = jnp.dot(x_ref[...], w_ref[...], preferred_element_type=jnp.float32)
    o_ref[...] = (acc + b_ref[...]).astype(o_ref.dtype)


def pack_params(w_join, b_join, w_fanout, b_fanout, emb_table,
                n_join_col, n_fanout, hist_dim, x_width=None,
                compute_dtype=jnp.bfloat16):
    """One-time parameter packing (outside the per-call path).

    Folds (a) the per-segment "sum" feature into the histogram weights and
    (b) the per-token block structure + virtual token into a single packed
    weight (K, N) and bias (1, N), with
      K = x feature width (zero rows for unused trailing columns),
      N = round_up(n_tokens * n_embd, 128) (zero pad columns),
      n_tokens = 1 + n_join_col + n_fanout.
    Weight is returned in `compute_dtype` (bf16), bias stays f32.
    """
    n_embd = w_join.shape[1]
    n_cols = n_join_col + n_fanout
    n_tokens = 1 + n_cols
    k_used = n_cols * hist_dim
    K = k_used if x_width is None else int(x_width)
    assert K >= k_used, "x must have at least n_cols*hist_dim feature columns"
    N_real = n_tokens * n_embd
    N = _round_up(N_real, 128)

    # cat([sum(seg), seg]) @ W  ==  seg @ (W[1:] + W[0])   (fold done in f32)
    w_eff_join = (w_join[1:] + w_join[0:1]).astype(jnp.float32)
    w_eff_fanout = (w_fanout[1:] + w_fanout[0:1]).astype(jnp.float32)

    w_big = jnp.zeros((K, N), jnp.float32)
    for c in range(n_cols):
        w_eff = w_eff_join if c < n_join_col else w_eff_fanout
        w_big = w_big.at[c * hist_dim:(c + 1) * hist_dim,
                         (1 + c) * n_embd:(2 + c) * n_embd].set(w_eff)

    b_big = jnp.zeros((1, N), jnp.float32)
    b_big = b_big.at[0, :n_embd].set(emb_table[1].astype(jnp.float32))  # virtual token (index 1)
    for c in range(n_cols):
        b = b_join if c < n_join_col else b_fanout
        b_big = b_big.at[0, (1 + c) * n_embd:(2 + c) * n_embd].set(b.astype(jnp.float32))

    return w_big.astype(compute_dtype), b_big


def _vmem_cap_bytes():
    try:
        kind = jax.devices()[0].device_kind.lower()
    except Exception:
        kind = ""
    if "7" in kind:           # v7x: 64 MiB per TensorCore; leave Mosaic scratch headroom
        return 56 * _MiB
    return 100 * _MiB         # v5e / v6e: 128 MiB physical VMEM


@functools.partial(jax.jit, static_argnames=("n_embd", "n_tokens", "tm"))
def scale_embedding(x, w_big, b_big, *, n_embd, n_tokens, tm=512):
    """x: (B, K) raw features (K == w_big.shape[0]). Returns (B, n_tokens, n_embd) f32."""
    B = x.shape[0]
    K, N = w_big.shape
    N_real = n_tokens * n_embd
    assert x.shape[1] == K, (x.shape, K)

    x_lp = x.astype(w_big.dtype)        # bf16 stream (f32 MXU accumulation in-kernel)
    out_dtype = jnp.float32

    # Batch-tile selection:
    #  * >= 2 grid steps for large B so ("parallel",) shards across v7x's 2 TCs,
    #  * sublane-aligned (multiple of 8) or equal to the full (small) batch dim,
    #  * shrunk until the VMEM footprint fits the per-generation budget.
    if B <= 8:
        tm_eff = B
    else:
        tm_eff = max(8, min(tm, _round_up(-(-B // 2), 8)))

    cap = _vmem_cap_bytes()
    out_item = jnp.dtype(out_dtype).itemsize

    def footprint(t):
        # double-buffered x/out tiles + resident (constant-index, so not re-DMA'd,
        # but budget 2 buffers) packed weight + bias
        return (2 * t * (K * x_lp.dtype.itemsize + N * out_item)
                + 2 * K * N * w_big.dtype.itemsize + 2 * N * 4)

    while tm_eff > 8 and footprint(tm_eff) + 2 * _MiB > cap:
        tm_eff = max(8, _round_up(tm_eff // 2, 8))
    vmem_limit = int(min(cap, max(footprint(tm_eff) + 2 * _MiB, 16 * _MiB)))

    grid = (pl.cdiv(B, tm_eff),)        # ragged last tile handled by Pallas masking

    out2d = pl.pallas_call(
        _scale_embedding_kernel,
        out_shape=jax.ShapeDtypeStruct((B, N), out_dtype),
        grid_spec=pltpu.PrefetchScalarGridSpec(
            num_scalar_prefetch=0,
            grid=grid,
            in_specs=[
                # streamed batch-row tiles (bf16)
                pl.BlockSpec((tm_eff, K), lambda i: (i, 0)),
                # packed weight: constant block index -> grid-resident, no re-fetch
                pl.BlockSpec((K, N), lambda i: (0, 0)),
                # packed bias (f32): constant block index -> grid-resident
                pl.BlockSpec((1, N), lambda i: (0, 0)),
            ],
            # lane-dense output slab (tm, N), N a multiple of 128
            out_specs=pl.BlockSpec((tm_eff, N), lambda i: (i, 0)),
        ),
        compiler_params=pltpu.CompilerParams(
            dimension_semantics=("parallel",),
            vmem_limit_bytes=vmem_limit,
        ),
    )(x_lp, w_big, b_big)

    return out2d[:, :N_real].reshape(B, n_tokens, n_embd)


def init_params(key, n_join_col, n_fanout, hist_dim, n_embd, dtype=jnp.float32):
    """Matches nn.Linear U(-1/sqrt(fan_in), 1/sqrt(fan_in)) and nn.Embedding N(0,1)."""
    in_f = hist_dim + 1
    kj_w, kj_b, kf_w, kf_b, ke = jax.random.split(key, 5)
    bound = 1.0 / (in_f ** 0.5)
    # weights stored as (in_features, out_features) so the math is x @ W + b
    w_join = jax.random.uniform(kj_w, (in_f, n_embd), dtype, -bound, bound)
    b_join = jax.random.uniform(kj_b, (n_embd,), dtype, -bound, bound)
    w_fanout = jax.random.uniform(kf_w, (in_f, n_embd), dtype, -bound, bound)
    b_fanout = jax.random.uniform(kf_b, (n_embd,), dtype, -bound, bound)
    emb_table = jax.random.normal(ke, (2, n_embd), dtype)
    return w_join, b_join, w_fanout, b_fanout, emb_table


def scale_embedding_ref(x, w_join, b_join, w_fanout, b_fanout, emb_table,
                        n_join_col, n_fanout, hist_dim):
    """Pure-JAX mirror of the PyTorch forward (sum -> concat -> Linear per column)."""
    B = x.shape[0]
    n_embd = w_join.shape[1]
    feats = [jnp.broadcast_to(emb_table[1], (B, n_embd))]
    for i in range(n_join_col):
        seg = x[:, i * hist_dim:(i + 1) * hist_dim]
        s = jnp.sum(seg, axis=1, keepdims=True)
        feats.append(jnp.concatenate([s, seg], axis=1) @ w_join + b_join)
    off = n_join_col * hist_dim
    for i in range(n_fanout):
        seg = x[:, off + i * hist_dim: off + (i + 1) * hist_dim]
        s = jnp.sum(seg, axis=1, keepdims=True)
        feats.append(jnp.concatenate([s, seg], axis=1) @ w_fanout + b_fanout)
    return jnp.stack(feats, axis=1)


if __name__ == "__main__":
    n_join_col, n_fanout, hist_dim, n_embd = 4, 2, 16, 32
    B = 16
    n_tokens = 1 + n_join_col + n_fanout
    K = (n_join_col + n_fanout) * hist_dim      # x feature width

    key = jax.random.PRNGKey(0)
    kx, kp = jax.random.split(key)
    x = jax.random.normal(kx, (B, K), jnp.float32)
    w_join, b_join, w_fanout, b_fanout, emb_table = init_params(
        kp, n_join_col, n_fanout, hist_dim, n_embd)

    # one-time packing of the module parameters (outside the per-call path)
    w_big, b_big = pack_params(w_join, b_join, w_fanout, b_fanout, emb_table,
                               n_join_col, n_fanout, hist_dim, x_width=K)

    out = scale_embedding(x, w_big, b_big, n_embd=n_embd, n_tokens=n_tokens)
    out = jax.block_until_ready(out)

    ref = scale_embedding_ref(x, w_join, b_join, w_fanout, b_fanout, emb_table,
                              n_join_col, n_fanout, hist_dim)

    assert out.shape == (B, n_tokens, n_embd), out.shape
    # bf16 x/W streams (f32 accumulation) + exact sum-fold: tolerance ~1e-2 scale.
    assert jnp.allclose(out, ref, atol=3e-2, rtol=3e-2), \
        float(jnp.max(jnp.abs(out - ref)))

    print("KERNEL_OK")
</pallas_src>

<mosaic_0001>
module attributes {stable_mosaic.version = 11 : i64} {
  func.func @_scale_embedding_kernel(%arg0: i32, %arg1: memref<8x96xbf16, #tpu.memory_space<vmem>>, %arg2: memref<96x256xbf16, #tpu.memory_space<vmem>>, %arg3: memref<1x256xf32, #tpu.memory_space<vmem>>, %arg4: memref<8x256xf32, #tpu.memory_space<vmem>>) attributes {dimension_semantics = [#tpu.dimension_semantics<parallel>], iteration_bounds = array<i64: 2>, scalar_prefetch = 0 : i64, scratch_operands = 0 : i64, tpu.core_type = #tpu.core_type<tc>, window_params = [{transform_indices = @transform_0, window_bounds = array<i64: 8, 96>}, {pipeline_mode = #tpu.pipeline_mode<synchronous>, transform_indices = @transform_1, window_bounds = array<i64: 96, 256>}, {pipeline_mode = #tpu.pipeline_mode<synchronous>, transform_indices = @transform_2, window_bounds = array<i64: 1, 256>}, {transform_indices = @transform_3, window_bounds = array<i64: 8, 256>}]} {
    %c0 = arith.constant 0 : index
    %c0_0 = arith.constant 0 : index
    %0 = vector.load %arg1[%c0, %c0_0] : memref<8x96xbf16, #tpu.memory_space<vmem>>, vector<8x96xbf16>
    %c0_1 = arith.constant 0 : index
    %c0_2 = arith.constant 0 : index
    %1 = vector.load %arg2[%c0_1, %c0_2] : memref<96x256xbf16, #tpu.memory_space<vmem>>, vector<96x256xbf16>
    %cst = arith.constant dense<0.000000e+00> : vector<8x256xf32>
    %2 = tpu.matmul %0, %1, %cst {dimension_numbers = #tpu.dot_dimension_numbers<[1], [0], [0], [1], [0, 0, 1, 1], [], []>} : vector<8x96xbf16>, vector<96x256xbf16>, vector<8x256xf32> -> vector<8x256xf32>
    %c0_3 = arith.constant 0 : index
    %c0_4 = arith.constant 0 : index
    %3 = vector.load %arg3[%c0_3, %c0_4] : memref<1x256xf32, #tpu.memory_space<vmem>>, vector<1x256xf32>
    %4 = vector.broadcast %3 : vector<1x256xf32> to vector<8x256xf32>
    %5 = arith.addf %2, %4 : vector<8x256xf32>
    %c0_5 = arith.constant 0 : index
    %c0_6 = arith.constant 0 : index
    %6 = vector.load %arg4[%c0_5, %c0_6] : memref<8x256xf32, #tpu.memory_space<vmem>>, vector<8x256xf32>
    tpu.vector_store %arg4[%c0_5, %c0_6], %5 {strides = array<i32>} : memref<8x256xf32, #tpu.memory_space<vmem>>, vector<8x256xf32>,
    return
  }
  func.func @transform_0(%arg0: i32) -> (i32, i32) {
    %c0_i32 = arith.constant 0 : i32
    %c0_i32_0 = arith.constant 0 : i32
    return %arg0, %c0_i32 : i32, i32
  }
  func.func @transform_1(%arg0: i32) -> (i32, i32) {
    %c0_i32 = arith.constant 0 : i32
    %c0_i32_0 = arith.constant 0 : i32
    %c0_i32_1 = arith.constant 0 : i32
    return %c0_i32, %c0_i32_0 : i32, i32
  }
  func.func @transform_2(%arg0: i32) -> (i32, i32) {
    %c0_i32 = arith.constant 0 : i32
    %c0_i32_0 = arith.constant 0 : i32
    %c0_i32_1 = arith.constant 0 : i32
    return %c0_i32, %c0_i32_0 : i32, i32
  }
  func.func @transform_3(%arg0: i32) -> (i32, i32) {
    %c0_i32 = arith.constant 0 : i32
    %c0_i32_0 = arith.constant 0 : i32
    return %arg0, %c0_i32 : i32, i32
  }
}

</mosaic_0001>

<bundles_post_ra>
// kernel: scale_embedding.1
= control target key start
LH: loop header
LB: loop body
LE: loop exit
PB: predicated region body
PF: predicated region fallthrough
CT: control target
= control target key end

     0   :  { %8 = vsyncpa [#allocation3], 0  ;;  %s513_s12 = smov 0   ;;  %s572_s0 = inlined_call_operand.vmem [shape: bf16[16,96], index: 0, kind: input, shape index: {}]   ;;  %s573_s1 = inlined_call_operand.hbm [shape: bf16[96,256], index: 1, kind: input, shape index: {}]   ;;  %s574_s2 = inlined_call_operand.vmem [shape: f32[1,256], index: 2, kind: input, shape index: {}]   ;;  %s575_s3 = inlined_call_operand.vmem [shape: f32[16,256], index: 3, kind: output, shape index: {}]  }
   0x1 LB: > { %s519_s13 = sadd.s32 4294967295, %s487_s12   ;;  %p385_p0 = scmp.ge.s32.totalorder %s487_s12, 1  ;;  %s487_s12 = sphi %s513_s12, %s14_s12  }
   0x2   : > { %p113_p1 = scmp.lt.s32.totalorder %s487_s12, 3  ;;  %s489_s14 = smov [#allocation2]  }
   0x3   : > { %s125_s15 = sshll.u32 %s489_s14, 4  ;;  %p576_p3 = scmp.eq.s32.totalorder %s519_s13, 0  ;;  %s126_s15 = int_to_ptr.vmem [resolvable:$true] %s125_s15 }
   0x4   : > { %p523_p2 = pnand %p385_p0, %p113_p1  ;;  %s449_s20 = scalar_lea.hbm %s573_s1, 1536 }
   0x5   : > { %p450_p6 = scmp.ne.s32.totalorder %s573_s1, %s449_s20  ;;  %p456_p10 = scmp.lt.u32.totalorder %s449_s20, %s573_s1 }
   0x6   : > { %s578_s16 = scalar_select %p523_p2, 1, 0 }
   0x7   : > { %p413_p4 = pneg %p523_p2 }
   0x9   : > { %p532_p5 = pnand %p576_p3, %p413_p4 }
   0xb   : > { %p451_p7 = pneg %p532_p5 }
   0xd   : > { %p452_p8 = pnand %p451_p7, %p450_p6 }
   0xf   : > { %p453_p9 = pneg %p452_p8 }
  0x11   : > { %p458_p11 = pnand %p456_p10, %p453_p9 }
  0x13   : > { %461 = shalt.err (!%p458_p11)
}
  0x14   : > { %s462_s25 = scalar_lea.vmem %s126_s15, 1536  ;;  %p470_p1 = scmp.lt.s32.totalorder %s126_s15, %s126_s15 }
  0x15   : > { %p463_p12 = scmp.ne.s32.totalorder %s126_s15, %s462_s25  ;;  %p471_p4 = scmp.lt.s32.totalorder %s462_s25, %s462_s25 }
  0x17   : > { %p465_p13 = pnand %p463_p12, %p451_p7  ;;  %p472_p3 = por %p471_p4, %p470_p1 }
  0x19   : > { %p466_p0 = pneg %p465_p13 }
  0x1b   : > { %p473_p2 = pnand %p472_p3, %p466_p0 }
  0x1d   : > { %476 = shalt.err (!%p473_p2)
}
  0x1e   : > { %s490_s26 = smov 128   ;;  %s491_s27 = smov 8  }
  0x1f   : > { %416 = dma.hbm_to_vmem [thread:$0]  (!%p532_p5), %s573_s1, 1536, %s126_s15, [#allocation3], %s490_s26, %s490_s26, %s491_s27  }
  0x20   : > { %p580_p6 = scmp.ne.s32.totalorder %s578_s16, 0 }
  0x21   : > { %p581_p8 = scmp.eq.s32.totalorder (!%p580_p6), %s519_s13, 0 }
  0x22   : > { %151 = sbr.rel (%p580_p6) target bundleno = 283 (0x11b), region = 32 }
  0x29   : > { %482 = dma.done.wait (%p581_p8), [#allocation3], 1536   ;;  %p582_p7 = pmov %p581_p8 }
  0x2a   : > { %v492_v0 = vmov 0   ;;  %v431_v1 = vld [vmem:[#allocation2 + $0x4] ss:$8 sps:$4 sm:$0xff]   ;;  %v433_v2 = vld [vmem:[#allocation2] ss:$8 sps:$4 sm:$0xff]   ;;  %p174_p2 = scmp.lt.s32.totalorder %s519_s13, 1  ;;  %v199_v14 = vlaneseq }
  0x2b   : > { %484 = vsyncadd (%p582_p7), [#allocation3], 4294965760  ;;  %305 = vmatprep.mubr.bf16.mxu0 %v492_v0  ;;  %273 = vmatprep.subr.bf16.mxu0 %v431_v1  ;;  %v434_v3 = vld [vmem:[#allocation2 + $0x14] ss:$8 sps:$4 sm:$0xff]   ;;  %v436_v4 = vld [vmem:[#allocation2 + $0x10] ss:$8 sps:$4 sm:$0xff]  }
  0x2c   : > { %274 = vmatpush1.bf16.msra.mxu0 %v433_v2  ;;  %v437_v5 = vld [vmem:[#allocation2 + $0x24] ss:$8 sps:$4 sm:$0xff]   ;;  %v439_v6 = vld [vmem:[#allocation2 + $0x20] ss:$8 sps:$4 sm:$0xff]   ;;  %v440_v7 = vld [vmem:[#allocation2 + $0x34] ss:$8 sps:$4 sm:$0xff]  }
  0x2d   : > { %275 = vmatprep.subr.bf16.mxu0 %v434_v3  ;;  %v442_v8 = vld [vmem:[#allocation2 + $0x30] ss:$8 sps:$4 sm:$0xff]   ;;  %v443_v9 = vld [vmem:[#allocation2 + $0x44] ss:$8 sps:$4 sm:$0xff]   ;;  %s584_s13 = smov (!%p174_p2, %s519_s13), 1  ;;  %vm269_vm0 = vcmask 785408  }
  0x2e   : > { %v445_v10 = vld [vmem:[#allocation2 + $0x40] ss:$8 sps:$4 sm:$0xff]   ;;  %v446_v11 = vld [vmem:[#allocation2 + $0x54] ss:$8 sps:$4 sm:$0xff]   ;;  %s390_s30 = sshll.u32 %s584_s13, 2  ;;  %v200_v15 = vshrl.u32 %v199_v14, 7 }
  0x2f   : > { %v448_v12 = vld [vmem:[#allocation2 + $0x50] ss:$8 sps:$4 sm:$0xff]   ;;  %s177_s6 = scalar_lea.vmem %s572_s0, %s390_s30  ;;  %v197_v17 = vld [vmem:[%s574_s2] sm:$0x3]  ;;  %s408_s9 = sshll.u32 %s584_s13, 4 }
  0x30   : > { %276 = vmatpush1.bf16.msra.mxu0 %v436_v4  ;;  %v184_v13 = vld [vmem:[%s177_s6] sm:$0xf]  ;;  %v201_v16 = vsub.s32 0, %v200_v15  ;;  %v205_v18 = vsub.s32 1, %v200_v15  ;;  %s182_s14 = scalar_lea.vmem %s575_s3, %s408_s9 }
  0x31   : > { %277 = vmatprep.subr.bf16.mxu0 %v437_v5 }
  0x32   : > { %v202_v19 = vrot.slane %v197_v17, %v201_v16  ;;  %v206_v20 = vrot.slane %v197_v17, %v205_v18 }
  0x34   : > { %278 = vmatpush1.bf16.msra.mxu0 %v439_v6 }
  0x35   : > { %279 = vmatprep.subr.bf16.mxu0 %v440_v7 }
  0x38   : > { %280 = vmatpush1.bf16.msra.mxu0 %v442_v8 }
  0x39   : > { %281 = vmatprep.subr.bf16.mxu0 %v443_v9 }
  0x3c   : > { %282 = vmatpush1.bf16.msra.mxu0 %v445_v10 }
  0x3d   : > { %283 = vmatprep.subr.bf16.mxu0 %v446_v11 }
  0x40   : > { %284 = vmatpush1.bf16.msra.mxu0 %v448_v12 }
  0x43   : > { %405 = vmatmul.mubr.msk.bf16.vlgmr.msra.gmra.mrb[0].mxu0 %vm269_vm0, %v184_v13 }
 0x116   : > { %v307_v21 = vpop.f32.mrb[0].mxu0 }
 0x117   : > { %v308_v22 = vadd.f32 %v307_v21, %v202_v19  ;;  %v309_v23 = vpop.f32.mrb[1].mxu0 }
 0x118   : > { %v310_v24 = vadd.f32 %v309_v23, %v206_v20  ;;  %v311_v25 = vpop.f32.mrb[2].mxu0 }
 0x119   : > { %314 = vst [vmem:[%s182_s14] sm:$0xff] %v308_v22  ;;  %v312_v26 = vpop.f32.mrb[3].mxu0 }
 0x11a   : > { %315 = vst [vmem:[%s182_s14 + $0x8] sm:$0xff] %v310_v24 }
 0x11b PF: > { %s14_s12 = sadd.s32 1, %s487_s12  }
 0x11c   : > { %p11_p3 = scmp.ge.s32.totalorder %s14_s12, 4  }
 0x11e   :  { %13 = sbr.rel (!%p11_p3) target bundleno = 1 (0x1), region = 67 }
 0x125   :  { %337 = vsyncpa [#allocation3], 1 }
 0x126   :  { %339 = vsyncpa [#allocation3 + $0x1], 1 }

</bundles_post_ra>
